<compile_context>
chip_gen: v5e
topology: v5e:2x2
jax: 0.10.0
libtpu: 0.0.40
codegen_flags: <defaults>
</compile_context>

<pallas_src>
import jax
import jax.numpy as jnp
from jax.experimental import pallas as pl
from jax.experimental.pallas import tpu as pltpu

_MiB = 1024 * 1024


def _make_wla_kernel(n_layer):
    """Build a kernel closed over the (static) number of layers."""

    def kernel(w_ref, b_ref, *refs):
        # w_ref : SMEM (L,) f32 -- 1x1 conv weights (scalar-prefetched)
        # b_ref : SMEM (1,) f32 -- conv bias        (scalar-prefetched)
        # refs  : L input refs of shape (tR, C) in VMEM, then the (tR, C) output
        x_refs, o_ref = refs[:n_layer], refs[n_layer]
        acc = jnp.full(o_ref.shape, b_ref[0], dtype=jnp.float32)
        # L is small & static: unrolled weighted reduction on the VPU
        # (free filler under the HBM-bound DMA stream).
        for l in range(n_layer):
            acc = acc + w_ref[l] * x_refs[l][...].astype(jnp.float32)
        o_ref[...] = acc.astype(o_ref.dtype)

    return kernel


def _vmem_capacity_bytes():
    """Generation-aware VMEM capacity (128 MiB v5e/v6e, 64 MiB per TC v7x)."""
    try:
        return int(pltpu.get_tpu_info().vmem_capacity_bytes)
    except Exception:
        return 64 * _MiB  # conservative fallback: v7x per-TensorCore VMEM


def _pick_lane_width(total, natural_c, max_c=2048):
    """Lane-dense (multiple-of-128) last dim for the flattened 2-D view.

    Returns natural_c unchanged if it is already a multiple of 128, otherwise
    the largest multiple of 128 (capped at max_c) that divides the total
    element count, or None when no lane-dense factorisation exists."""
    if natural_c % 128 == 0:
        return natural_c
    best = None
    c = 128
    while c <= min(total, max_c):
        if total % c == 0:
            best = c
        c += 128
    return best


def _pick_row_tile(rows, C, L, dtype_bytes, align, budget):
    """Largest dtype-aligned row tile whose pipeline footprint fits the budget.

    Footprint = double-buffered (L input + 1 output) blocks
              + the f32 accumulator temp materialised by the unrolled sum."""
    per_row = 2 * (L + 1) * C * dtype_bytes + C * 4
    max_rows = max(budget // per_row, 1)
    if max_rows >= rows:
        return rows, per_row * rows          # whole extent fits (always legal)
    tR = (max_rows // align) * align          # dtype-native sublane alignment
    if tR == 0:
        tR = min(align, rows)                 # smallest legal aligned tile
    return tR, per_row * tR


def weighted_layer_aggregation(xs, weight, bias, *, vmem_budget_bytes=None):
    """xs: list of n_layer arrays, each (B, S, H).
    weight: (1, n_layer, 1, 1) conv weight; bias: (1,) conv bias.
    Returns (B, S, H) == Conv2d_1x1(stack(xs).transpose(0, 1)).squeeze(1)."""
    L = len(xs)
    B, S, H = xs[0].shape
    dtype = xs[0].dtype
    dtype_bytes = jnp.dtype(dtype).itemsize
    total = B * S * H

    w_flat = weight.reshape(L).astype(jnp.float32)
    b_flat = bias.reshape(1).astype(jnp.float32)

    # ---- lane-dense flattened 2-D view (free contiguous reshape) -----------
    C = _pick_lane_width(total, H)
    if C is None:
        # No multiple-of-128 factorisation (rare tiny/odd shapes): keep the
        # natural (B*S, H) view; Pallas masks the partial-lane stores.
        C = H
    rows = total // C
    xs2d = [x.reshape(rows, C) for x in xs]

    # ---- generation-aware VMEM budget & footprint-derived limit ------------
    vmem_cap = _vmem_capacity_bytes()
    if vmem_budget_bytes is None:
        # ~5/8 of capacity: ~80 MiB on v5e/v6e (128 MiB), ~40 MiB on v7x (64 MiB).
        vmem_budget_bytes = (vmem_cap * 5) // 8
    # Sublane packing: 8 rows f32, 16 rows bf16/f16, 32 rows int8/fp8.
    align = 8 * max(1, 4 // dtype_bytes)
    tR, footprint = _pick_row_tile(rows, C, L, dtype_bytes, align,
                                   vmem_budget_bytes)
    # Scoped limit = actual footprint + internal-scratch margin, clamped below
    # the physical capacity of the current generation.
    vmem_limit = int(min(max(footprint + 4 * _MiB, 32 * _MiB),
                         (vmem_cap * 9) // 10))

    n_tiles = pl.cdiv(rows, tR)
    # index_map also receives the scalar-prefetch refs (positional) -> *_
    blk = pl.BlockSpec((tR, C), lambda i, *_: (i, 0))

    out2d = pl.pallas_call(
        _make_wla_kernel(L),
        out_shape=jax.ShapeDtypeStruct((rows, C), dtype),
        grid_spec=pltpu.PrefetchScalarGridSpec(
            num_scalar_prefetch=2,            # weights + bias land in SMEM
            grid=(n_tiles,),                   # single flattened parallel axis
            in_specs=[blk] * L,                # one spec per layer input
            out_specs=blk,
        ),
        compiler_params=pltpu.CompilerParams(
            dimension_semantics=("parallel",),  # balanced 2-TC split on v7x
            vmem_limit_bytes=vmem_limit,
        ),
        cost_estimate=pl.CostEstimate(
            flops=2 * L * total,
            transcendentals=0,
            bytes_accessed=(L + 1) * total * dtype_bytes + L * 4 + 4,
        ),
    )(w_flat, b_flat, *xs2d)

    return out2d.reshape(B, S, H)


def _reference(xs, weight, bias):
    x = jnp.transpose(jnp.stack(xs), (1, 0, 2, 3))            # (B, L, S, H)
    return jnp.einsum("blsh,l->bsh",
                      x.astype(jnp.float32),
                      weight.reshape(-1).astype(jnp.float32)) + bias[0]


if __name__ == "__main__":
    n_layer, B, S, H = 4, 2, 8, 32

    key = jax.random.PRNGKey(0)
    k_w, k_b, k_x = jax.random.split(key, 3)

    # Deterministic "Conv2d(n_layer, 1, kernel_size=1)" parameters
    # (PyTorch-style uniform init, bound = 1/sqrt(fan_in), fan_in = n_layer).
    bound = 1.0 / jnp.sqrt(jnp.float32(n_layer))
    weight = jax.random.uniform(k_w, (1, n_layer, 1, 1),
                                minval=-bound, maxval=bound, dtype=jnp.float32)
    bias = jax.random.uniform(k_b, (1,), minval=-bound, maxval=bound,
                              dtype=jnp.float32)

    # Check 1: small unaligned H=32 -> lane-dense flattening path.
    xs = list(jax.random.normal(k_x, (n_layer, B, S, H), dtype=jnp.float32))
    out = jax.block_until_ready(weighted_layer_aggregation(xs, weight, bias))
    ref = _reference(xs, weight, bias)
    assert out.shape == (B, S, H)
    assert jnp.allclose(out, ref, atol=1e-5, rtol=1e-5)

    # Check 2: lane-aligned H=128 with a tiny VMEM budget to force multi-tile
    # pipelining along the flattened row axis.
    S2, H2 = 64, 128
    k_x2 = jax.random.fold_in(k_x, 1)
    xs2 = list(jax.random.normal(k_x2, (n_layer, B, S2, H2), dtype=jnp.float32))
    out2 = jax.block_until_ready(
        weighted_layer_aggregation(xs2, weight, bias,
                                   vmem_budget_bytes=64 * 1024))
    ref2 = _reference(xs2, weight, bias)
    assert out2.shape == (B, S2, H2)
    assert jnp.allclose(out2, ref2, atol=1e-5, rtol=1e-5)

    # Check 3: bf16 activations -> 16-row sublane-aligned tiles, f32 accumulate.
    S3, H3 = 16, 128
    k_x3 = jax.random.fold_in(k_x, 2)
    xs3 = list(jax.random.normal(k_x3, (n_layer, B, S3, H3),
                                 dtype=jnp.bfloat16))
    out3 = jax.block_until_ready(weighted_layer_aggregation(xs3, weight, bias))
    ref3 = _reference([x.astype(jnp.float32) for x in xs3], weight, bias)
    assert out3.shape == (B, S3, H3)
    assert jnp.allclose(out3.astype(jnp.float32), ref3, atol=2e-2, rtol=2e-2)

    print("KERNEL_OK")
</pallas_src>

<mosaic_0001>
module attributes {stable_mosaic.version = 11 : i64} {
  func.func @kernel(%arg0: i32, %arg1: memref<4xf32, #tpu.memory_space<smem>>, %arg2: memref<1xf32, #tpu.memory_space<smem>>, %arg3: memref<1x512xf32, #tpu.memory_space<vmem>>, %arg4: memref<1x512xf32, #tpu.memory_space<vmem>>, %arg5: memref<1x512xf32, #tpu.memory_space<vmem>>, %arg6: memref<1x512xf32, #tpu.memory_space<vmem>>, %arg7: memref<1x512xf32, #tpu.memory_space<vmem>>) attributes {dimension_semantics = [#tpu.dimension_semantics<parallel>], iteration_bounds = array<i64: 1>, scalar_prefetch = 2 : i64, scratch_operands = 0 : i64, tpu.core_type = #tpu.core_type<tc>, window_params = [{transform_indices = @transform_0, window_bounds = array<i64: 1, 512>}, {transform_indices = @transform_1, window_bounds = array<i64: 1, 512>}, {transform_indices = @transform_2, window_bounds = array<i64: 1, 512>}, {transform_indices = @transform_3, window_bounds = array<i64: 1, 512>}, {transform_indices = @transform_4, window_bounds = array<i64: 1, 512>}]} {
    %c0 = arith.constant 0 : index
    %0 = memref.load %arg2[%c0] : memref<1xf32, #tpu.memory_space<smem>>
    %1 = vector.broadcast %0 : f32 to vector<1x512xf32>
    %c0_0 = arith.constant 0 : index
    %2 = memref.load %arg1[%c0_0] : memref<4xf32, #tpu.memory_space<smem>>
    %c0_1 = arith.constant 0 : index
    %c0_2 = arith.constant 0 : index
    %3 = vector.load %arg3[%c0_1, %c0_2] : memref<1x512xf32, #tpu.memory_space<vmem>>, vector<1x512xf32>
    %4 = vector.broadcast %2 : f32 to vector<1x512xf32>
    %5 = arith.mulf %4, %3 : vector<1x512xf32>
    %6 = arith.addf %1, %5 : vector<1x512xf32>
    %c1 = arith.constant 1 : index
    %7 = memref.load %arg1[%c1] : memref<4xf32, #tpu.memory_space<smem>>
    %c0_3 = arith.constant 0 : index
    %c0_4 = arith.constant 0 : index
    %8 = vector.load %arg4[%c0_3, %c0_4] : memref<1x512xf32, #tpu.memory_space<vmem>>, vector<1x512xf32>
    %9 = vector.broadcast %7 : f32 to vector<1x512xf32>
    %10 = arith.mulf %9, %8 : vector<1x512xf32>
    %11 = arith.addf %6, %10 : vector<1x512xf32>
    %c2 = arith.constant 2 : index
    %12 = memref.load %arg1[%c2] : memref<4xf32, #tpu.memory_space<smem>>
    %c0_5 = arith.constant 0 : index
    %c0_6 = arith.constant 0 : index
    %13 = vector.load %arg5[%c0_5, %c0_6] : memref<1x512xf32, #tpu.memory_space<vmem>>, vector<1x512xf32>
    %14 = vector.broadcast %12 : f32 to vector<1x512xf32>
    %15 = arith.mulf %14, %13 : vector<1x512xf32>
    %16 = arith.addf %11, %15 : vector<1x512xf32>
    %c3 = arith.constant 3 : index
    %17 = memref.load %arg1[%c3] : memref<4xf32, #tpu.memory_space<smem>>
    %c0_7 = arith.constant 0 : index
    %c0_8 = arith.constant 0 : index
    %18 = vector.load %arg6[%c0_7, %c0_8] : memref<1x512xf32, #tpu.memory_space<vmem>>, vector<1x512xf32>
    %19 = vector.broadcast %17 : f32 to vector<1x512xf32>
    %20 = arith.mulf %19, %18 : vector<1x512xf32>
    %21 = arith.addf %16, %20 : vector<1x512xf32>
    %c0_9 = arith.constant 0 : index
    %c0_10 = arith.constant 0 : index
    %22 = vector.load %arg7[%c0_9, %c0_10] : memref<1x512xf32, #tpu.memory_space<vmem>>, vector<1x512xf32>
    tpu.vector_store %arg7[%c0_9, %c0_10], %21 {strides = array<i32>} : memref<1x512xf32, #tpu.memory_space<vmem>>, vector<1x512xf32>,
    return
  }
  func.func @transform_0(%arg0: i32, %arg1: memref<4xf32, #tpu.memory_space<smem>>, %arg2: memref<1xf32, #tpu.memory_space<smem>>) -> (i32, i32) {
    %c0_i32 = arith.constant 0 : i32
    %c0_i32_0 = arith.constant 0 : i32
    return %arg0, %c0_i32 : i32, i32
  }
  func.func @transform_1(%arg0: i32, %arg1: memref<4xf32, #tpu.memory_space<smem>>, %arg2: memref<1xf32, #tpu.memory_space<smem>>) -> (i32, i32) {
    %c0_i32 = arith.constant 0 : i32
    %c0_i32_0 = arith.constant 0 : i32
    return %arg0, %c0_i32 : i32, i32
  }
  func.func @transform_2(%arg0: i32, %arg1: memref<4xf32, #tpu.memory_space<smem>>, %arg2: memref<1xf32, #tpu.memory_space<smem>>) -> (i32, i32) {
    %c0_i32 = arith.constant 0 : i32
    %c0_i32_0 = arith.constant 0 : i32
    return %arg0, %c0_i32 : i32, i32
  }
  func.func @transform_3(%arg0: i32, %arg1: memref<4xf32, #tpu.memory_space<smem>>, %arg2: memref<1xf32, #tpu.memory_space<smem>>) -> (i32, i32) {
    %c0_i32 = arith.constant 0 : i32
    %c0_i32_0 = arith.constant 0 : i32
    return %arg0, %c0_i32 : i32, i32
  }
  func.func @transform_4(%arg0: i32, %arg1: memref<4xf32, #tpu.memory_space<smem>>, %arg2: memref<1xf32, #tpu.memory_space<smem>>) -> (i32, i32) {
    %c0_i32 = arith.constant 0 : i32
    %c0_i32_0 = arith.constant 0 : i32
    return %arg0, %c0_i32 : i32, i32
  }
}

</mosaic_0001>

<bundles_post_ra>
// kernel: tpu_custom_call.1
= control target key start
LH: loop header
LB: loop body
LE: loop exit
PB: predicated region body
PF: predicated region fallthrough
CT: control target
= control target key end

     0   :  { %s239_s24 = smov [#allocation3]   ;;  %s300_s0 = inlined_call_operand.hbm [shape: f32[4], index: 0, kind: input, shape index: {}]   ;;  %s301_s1 = inlined_call_operand.<no memory space> [shape: f32[1], index: 1, kind: input, shape index: {}]   ;;  %s302_s2 = inlined_call_operand.hbm [shape: f32[1,512], index: 2, kind: input, shape index: {}]   ;;  %s303_s3 = inlined_call_operand.hbm [shape: f32[1,512], index: 3, kind: input, shape index: {}]   ;;  %s304_s4 = inlined_call_operand.vmem [shape: f32[1,512], index: 4, kind: input, shape index: {}]   ;;  %s305_s5 = inlined_call_operand.hbm [shape: f32[1,512], index: 5, kind: input, shape index: {}]   ;;  %s306_s6 = inlined_call_operand.hbm [shape: f32[1,512], index: 6, kind: output, shape index: {}]  }
   0x1   :  { %s12_s23 = sshll.u32 %s300_s0, 4  ;;  %s13_s23 = int_to_ptr.hbm [resolvable:$true] %s12_s23 }
   0x2   :  { %15 = dma.hbm_to_smem %s13_s23, 16, %s239_s24, [#allocation2] }
   0x3   :  { %231 = dma.done.wait [#allocation2], 16 }
   0x4   :  { %232 = vsyncadd [#allocation2], 4294967280 }
   0x5   :  { %19 = sfence }
   0x6   :  { %20 = vsyncpa [#allocation6], 0 }
   0x7   :  { %21 = vsyncpa [#allocation9], 0  ;;  %s39_s27 = sshll.u32 %s303_s3, 4  ;;  %s40_s27 = int_to_ptr.hbm [resolvable:$true] %s39_s27 }
   0x8   :  { %22 = vsyncpa [#allocation7], 0  ;;  %s240_s28 = smov [#allocation8]   ;;  %s28_s0 = sshll.u32 %s302_s2, 4  ;;  %s29_s0 = int_to_ptr.hbm [resolvable:$true] %s28_s0 }
   0x9   :  { %s41_s29 = sshll.u32 %s240_s28, 4  ;;  %s241_s8 = smov [#allocation5]   ;;  %s42_s29 = int_to_ptr.vmem [resolvable:$true] %s41_s29 }
   0xa   :  { %44 = dma.hbm_to_vmem [thread:$0]  %s40_s27, 64, %s42_s29, [#allocation9]  }
   0xb   :  { %s30_s9 = sshll.u32 %s241_s8, 4  ;;  %s52_s12 = sshll.u32 %s305_s5, 4  ;;  %s31_s9 = int_to_ptr.vmem [resolvable:$true] %s30_s9  ;;  %s53_s12 = int_to_ptr.hbm [resolvable:$true] %s52_s12 }
   0xc   :  { %33 = dma.hbm_to_vmem [thread:$0]  %s29_s0, 64, %s31_s9, [#allocation6]  }
   0xd   :  { %s242_s3 = smov [#allocation10]  }
   0xe   :  { %s54_s13 = sshll.u32 %s242_s3, 4  ;;  %s55_s13 = int_to_ptr.vmem [resolvable:$true] %s54_s13 }
   0xf   :  { %57 = dma.hbm_to_vmem [thread:$0]  %s53_s12, 64, %s55_s13, [#allocation9]  }
  0x10   :  { %233 = dma.done.wait [#allocation6], 64  }
  0x11   :  { %234 = vsyncadd [#allocation6], 4294967232 }
  0x12   :  { %235 = dma.done.wait [#allocation9], 128  }
  0x13   :  { %236 = vsyncadd [#allocation9], 4294967168  ;;  %s72_s2 = sld [smem:[#allocation3]]  ;;  %v71_v0 = vstv %s301_s1  ;;  %v73_v1 = vld [vmem:[#allocation5] sm:$0xf]  ;;  %v92_v13 = vlaneseq  ;;  %s243_s20 = smov [#allocation11]  }
  0x14   :  { %s115_s14 = sld [smem:[#allocation3 + $0x1]]  ;;  %v78_v3 = vld [vmem:[#allocation8] sm:$0xf]  ;;  %v83_v4 = vld [vmem:[%s304_s4] sm:$0xf]  ;;  %s102_s1 = sshll.u32 %s243_s20, 4  ;;  %s103_s1 = int_to_ptr.vmem [resolvable:$true] %s102_s1 }
  0x15   :  { %s116_s15 = sld [smem:[#allocation3 + $0x2]]  ;;  %v88_v9 = vld [vmem:[#allocation10] sm:$0xf]  ;;  %s104_s23 = sshll.u32 %s306_s6, 4  ;;  %vm94_vm0 = vcmp.lt.s32.totalorder %v92_v13, 512  ;;  %s105_s23 = int_to_ptr.hbm [resolvable:$true] %s104_s23 }
  0x16   :  { %s117_s16 = sld [smem:[#allocation3 + $0x3]] }
  0x19   :  { %v74_v2 = vstv %s72_s2 }
  0x1a   :  { %v75_v5 = vmul.f32 %v74_v2, %v73_v1  ;;  %v79_v6 = vstv %s115_s14 }
  0x1b   :  { %v80_v7 = vmul.f32 %v79_v6, %v78_v3  ;;  %v84_v8 = vstv %s116_s15 }
  0x1c   :  { %v76_v10 = vadd.f32 %v75_v5, %v71_v0  ;;  %v85_v11 = vmul.f32 %v84_v8, %v83_v4  ;;  %v89_v12 = vstv %s117_s16 }
  0x1d   :  { %v90_v15 = vmul.f32 %v89_v12, %v88_v9 }
  0x1e   :  { %v81_v14 = vadd.f32 %v80_v7, %v76_v10 }
  0x20   :  { %v86_v16 = vadd.f32 %v85_v11, %v81_v14 }
  0x22   :  { %v91_v17 = vadd.f32 %v90_v15, %v86_v16 }
  0x24   :  { %96 = vst.msk [vmem:[#allocation11] sm:$0xf] %vm94_vm0, %v91_v17 }
  0x25   :  { %107 = dma.vmem_to_hbm [thread:$0]  %s103_s1, 64, %s105_s23, [#allocation7]  }
  0x26   :  { %237 = dma.done.wait [#allocation7], 64  }
  0x27   :  { %238 = vsyncadd [#allocation7], 4294967232 }
  0x28   :  { %112 = vsyncpa [#allocation6], 1 }
  0x29   :  { %113 = vsyncpa [#allocation9], 1 }
  0x2a   :  { %114 = vsyncpa [#allocation7], 1 }

</bundles_post_ra>
